<compile_context>
chip_gen: v7x
topology: tpu7x:2x2x1
jax: 0.10.0
libtpu: 0.0.40
codegen_flags: <defaults>
</compile_context>

<pallas_src>
import jax
import jax.numpy as jnp
import numpy as np
from jax.experimental import pallas as pl
from jax.experimental.pallas import tpu as pltpu


def _round_up(n, m):
    return ((n + m - 1) // m) * m


def _critic_kernel(x_ref, w1_ref, b1_ref, w2r_ref, b2_ref, o_ref):
    # Layer 1 on the MXU: (TB, D) x (D, H) -> (TB, H), f32 accumulation.
    x = x_ref[...]                       # (TB, D)
    w1 = w1_ref[...]                     # (D, H)   VMEM-resident across grid
    b1 = b1_ref[...]                     # (1, H)
    h = jnp.tanh(
        jnp.dot(x, w1, preferred_element_type=jnp.float32) + b1
    )                                    # (TB, H)

    # Output head on VPU + XLU: elementwise mul then cross-lane sum over H.
    # (An (H,1) MXU matmul would waste >99% of the array and serialize an
    #  extra push/pop after layer 1.)
    w2_row = w2r_ref[...]                # (1, H)
    y = jnp.sum(h * w2_row, axis=-1, keepdims=True)   # (TB, 1)
    o_ref[...] = y + b2_ref[0, 0]        # b2 is an SMEM scalar


def critic_forward(x, w1_t, b1, w2_t, b2, *, block_rows=512):
    """Fused Critic forward.

    x:    (B, D) f32
    w1_t: (D, H) f32   (f1.weight pre-transposed)
    b1:   (1, H) f32
    w2_t: (H, 1) f32   (output_layer.weight pre-transposed)
    b2:   (1, 1) f32
    returns (B, 1) f32
    """
    B, D = x.shape
    H = w1_t.shape[1]

    # Row tile: large enough to amortize MXU start/drain and per-step
    # overhead, rounded so the (8,128) sublane rule is satisfied.
    tb = min(block_rows, _round_up(B, 8))
    b_pad = _round_up(B, tb)
    if b_pad != B:
        x = jnp.pad(x, ((0, b_pad - B), (0, 0)))

    w2_row = w2_t.reshape(1, H)          # head weight as a broadcastable row

    out = pl.pallas_call(
        _critic_kernel,
        out_shape=jax.ShapeDtypeStruct((b_pad, 1), jnp.float32),
        grid=(b_pad // tb,),
        in_specs=[
            pl.BlockSpec((tb, D), lambda i: (i, 0)),        # x: streamed per tile
            pl.BlockSpec((D, H), lambda i: (0, 0)),         # w1: resident
            pl.BlockSpec((1, H), lambda i: (0, 0)),         # b1: resident
            pl.BlockSpec((1, H), lambda i: (0, 0)),         # w2 row: resident
            pl.BlockSpec(memory_space=pltpu.MemorySpace.SMEM),  # b2 scalar
        ],
        out_specs=pl.BlockSpec((tb, 1), lambda i: (i, 0)),
        compiler_params=pltpu.CompilerParams(
            dimension_semantics=("parallel",),               # v7x dual-TC; no-op on v5e/v6e
        ),
    )(x, w1_t, b1, w2_row, b2)

    return out[:B]
    # TODO(synk): if HBM reads of x ever dominate at very large batch, cast
    # x/w1 to bf16 for the DMA + matmul (keep f32 accumulation) and re-validate.


def init_critic_params(key, input_dim, hidden_dim):
    """Deterministic init mirroring nn.Linear defaults + the __init__ scaling."""
    k1, k2, k3, k4 = jax.random.split(key, 4)
    lim1 = 1.0 / np.sqrt(input_dim)
    lim2 = 1.0 / np.sqrt(hidden_dim)
    # Stored pre-transposed: (in_features, out_features).
    w1_t = jax.random.uniform(k1, (input_dim, hidden_dim), jnp.float32, -lim1, lim1)
    b1 = jax.random.uniform(k2, (1, hidden_dim), jnp.float32, -lim1, lim1)
    w2_t = jax.random.uniform(k3, (hidden_dim, 1), jnp.float32, -lim2, lim2)
    b2 = jax.random.uniform(k4, (1, 1), jnp.float32, -lim2, lim2)
    # self.output_layer.weight.data.mul_(0.1); self.output_layer.bias.data.mul_(0.0)
    w2_t = w2_t * 0.1
    b2 = b2 * 0.0
    return w1_t, b1, w2_t, b2


if __name__ == "__main__":
    input_dim, hidden_dim = 16, 32
    key = jax.random.PRNGKey(0)
    kx, kp = jax.random.split(key)
    w1_t, b1, w2_t, b2 = init_critic_params(kp, input_dim, hidden_dim)

    def ref(x):
        return jnp.tanh(x @ w1_t + b1) @ w2_t + b2

    # Case 1: batch not a multiple of the tile, small tile -> multiple grid
    # steps (exercises padding, pipelining, and resident weights).
    batch = 70
    x = jax.random.normal(kx, (batch, input_dim), jnp.float32)
    out = jax.block_until_ready(critic_forward(x, w1_t, b1, w2_t, b2, block_rows=16))
    np.testing.assert_allclose(np.asarray(out), np.asarray(ref(x)), rtol=1e-5, atol=1e-5)
    assert out.shape == (batch, 1) and out.dtype == jnp.float32

    # Case 2: tiny batch, default tile (single grid step).
    x2 = jax.random.normal(jax.random.PRNGKey(3), (8, input_dim), jnp.float32)
    out2 = jax.block_until_ready(critic_forward(x2, w1_t, b1, w2_t, b2))
    np.testing.assert_allclose(np.asarray(out2), np.asarray(ref(x2)), rtol=1e-5, atol=1e-5)
    assert out2.shape == (8, 1)

    print("KERNEL_OK")
</pallas_src>

<mosaic_0001>
module attributes {stable_mosaic.version = 11 : i64} {
  func.func @_critic_kernel(%arg0: i32, %arg1: memref<16x16xf32, #tpu.memory_space<vmem>>, %arg2: memref<16x32xf32, #tpu.memory_space<vmem>>, %arg3: memref<1x32xf32, #tpu.memory_space<vmem>>, %arg4: memref<1x32xf32, #tpu.memory_space<vmem>>, %arg5: memref<1x1xf32, #tpu.memory_space<smem>>, %arg6: memref<16x1xf32, #tpu.memory_space<vmem>>) attributes {dimension_semantics = [#tpu.dimension_semantics<parallel>], iteration_bounds = array<i64: 5>, scalar_prefetch = 0 : i64, scratch_operands = 0 : i64, tpu.core_type = #tpu.core_type<tc>, window_params = [{transform_indices = @transform_0, window_bounds = array<i64: 16, 16>}, {pipeline_mode = #tpu.pipeline_mode<synchronous>, transform_indices = @transform_1, window_bounds = array<i64: 16, 32>}, {pipeline_mode = #tpu.pipeline_mode<synchronous>, transform_indices = @transform_2, window_bounds = array<i64: 1, 32>}, {pipeline_mode = #tpu.pipeline_mode<synchronous>, transform_indices = @transform_3, window_bounds = array<i64: 1, 32>}, {transform_indices = @transform_4, window_bounds = array<i64: 1, 1>}, {transform_indices = @transform_5, window_bounds = array<i64: 16, 1>}]} {
    %c0 = arith.constant 0 : index
    %c0_0 = arith.constant 0 : index
    %0 = vector.load %arg1[%c0, %c0_0] : memref<16x16xf32, #tpu.memory_space<vmem>>, vector<16x16xf32>
    %c0_1 = arith.constant 0 : index
    %c0_2 = arith.constant 0 : index
    %1 = vector.load %arg2[%c0_1, %c0_2] : memref<16x32xf32, #tpu.memory_space<vmem>>, vector<16x32xf32>
    %c0_3 = arith.constant 0 : index
    %c0_4 = arith.constant 0 : index
    %2 = vector.load %arg3[%c0_3, %c0_4] : memref<1x32xf32, #tpu.memory_space<vmem>>, vector<1x32xf32>
    %cst = arith.constant dense<0.000000e+00> : vector<16x32xf32>
    %3 = tpu.matmul %0, %1, %cst {dimension_numbers = #tpu.dot_dimension_numbers<[1], [0], [0], [1], [0, 0, 1, 1], [], []>} : vector<16x16xf32>, vector<16x32xf32>, vector<16x32xf32> -> vector<16x32xf32>
    %4 = vector.broadcast %2 : vector<1x32xf32> to vector<16x32xf32>
    %5 = arith.addf %3, %4 : vector<16x32xf32>
    %6 = math.tanh %5 : vector<16x32xf32>
    %c0_5 = arith.constant 0 : index
    %c0_6 = arith.constant 0 : index
    %7 = vector.load %arg4[%c0_5, %c0_6] : memref<1x32xf32, #tpu.memory_space<vmem>>, vector<1x32xf32>
    %8 = vector.broadcast %7 : vector<1x32xf32> to vector<16x32xf32>
    %9 = arith.mulf %6, %8 : vector<16x32xf32>
    %cst_7 = arith.constant dense<0.000000e+00> : vector<16xf32>
    %10 = vector.multi_reduction <add>, %9, %cst_7 [1] : vector<16x32xf32> to vector<16xf32>
    %11 = vector.shape_cast %10 : vector<16xf32> to vector<16x1xf32>
    %c0_8 = arith.constant 0 : index
    %c0_9 = arith.constant 0 : index
    %12 = memref.load %arg5[%c0_8, %c0_9] : memref<1x1xf32, #tpu.memory_space<smem>>
    %13 = vector.broadcast %12 : f32 to vector<16x1xf32>
    %14 = arith.addf %11, %13 : vector<16x1xf32>
    %c0_10 = arith.constant 0 : index
    %c0_11 = arith.constant 0 : index
    %15 = vector.load %arg6[%c0_10, %c0_11] : memref<16x1xf32, #tpu.memory_space<vmem>>, vector<16x1xf32>
    tpu.vector_store %arg6[%c0_10, %c0_11], %14 {strides = array<i32>} : memref<16x1xf32, #tpu.memory_space<vmem>>, vector<16x1xf32>,
    return
  }
  func.func @transform_0(%arg0: i32) -> (i32, i32) {
    %c0_i32 = arith.constant 0 : i32
    %c0_i32_0 = arith.constant 0 : i32
    return %arg0, %c0_i32 : i32, i32
  }
  func.func @transform_1(%arg0: i32) -> (i32, i32) {
    %c0_i32 = arith.constant 0 : i32
    %c0_i32_0 = arith.constant 0 : i32
    %c0_i32_1 = arith.constant 0 : i32
    return %c0_i32, %c0_i32_0 : i32, i32
  }
  func.func @transform_2(%arg0: i32) -> (i32, i32) {
    %c0_i32 = arith.constant 0 : i32
    %c0_i32_0 = arith.constant 0 : i32
    %c0_i32_1 = arith.constant 0 : i32
    return %c0_i32, %c0_i32_0 : i32, i32
  }
  func.func @transform_3(%arg0: i32) -> (i32, i32) {
    %c0_i32 = arith.constant 0 : i32
    %c0_i32_0 = arith.constant 0 : i32
    %c0_i32_1 = arith.constant 0 : i32
    return %c0_i32, %c0_i32_0 : i32, i32
  }
  func.func @transform_4(%arg0: i32) -> (i32, i32) {
    %c0_i32 = arith.constant 0 : i32
    %c0_i32_0 = arith.constant 0 : i32
    %c0_i32_1 = arith.constant 0 : i32
    return %c0_i32, %c0_i32_0 : i32, i32
  }
  func.func @transform_5(%arg0: i32) -> (i32, i32) {
    %c0_i32 = arith.constant 0 : i32
    %c0_i32_0 = arith.constant 0 : i32
    return %arg0, %c0_i32 : i32, i32
  }
}

</mosaic_0001>

<bundles_post_ra>
// kernel: tpu_custom_call.1
= control target key start
LH: loop header
LB: loop body
LE: loop exit
PB: predicated region body
PF: predicated region fallthrough
CT: control target
= control target key end

     0   :  { %s486_s20 = smov 0   ;;  %s518_s0 = inlined_call_operand.vmem [shape: f32[80,16], index: 0, kind: input, shape index: {}]   ;;  %s519_s1 = inlined_call_operand.vmem [shape: f32[16,32], index: 1, kind: input, shape index: {}]   ;;  %s520_s2 = inlined_call_operand.vmem [shape: f32[1,32], index: 2, kind: input, shape index: {}]   ;;  %s521_s3 = inlined_call_operand.vmem [shape: f32[1,32], index: 3, kind: input, shape index: {}]   ;;  %s522_s4 = inlined_call_operand.<no memory space> [shape: f32[1,1], index: 4, kind: input, shape index: {}]   ;;  %s523_s5 = inlined_call_operand.vmem [shape: f32[80,1], index: 5, kind: output, shape index: {}]  }
   0x1   :  { %10 = sst [smem:[#allocation2]] %s522_s4 }
   0x2 LB: > { %s403_s21 = sadd.s32 4294967295, %s451_s20   ;;  %p407_p0 = scmp.ge.s32.totalorder %s451_s20, 1  ;;  %s451_s20 = sphi %s486_s20, %s16_s20  }
   0x3   : > { %p189_p1 = scmp.lt.s32.totalorder %s451_s20, 6 }
   0x5   : > { %p190_p2 = pnand %p407_p0, %p189_p1 }
   0x6   : > { %v231_v0 = vld [vmem:[%s519_s1] sm:$0xff] (!%p190_p2)  ;;  %v232_v1 = vld [vmem:[%s519_s1 + $0x8] sm:$0xff] (!%p190_p2)  ;;  %s408_s25 = sshll.u32 (!%p190_p2), %s403_s21, 1  ;;  %vm240_vm0 = vcmask (!%p190_p2), 130048   ;;  %vm333_vm1 = vcmask (!%p190_p2), 261120   ;;  %s340_s9 = sld [smem:[#allocation2]] (!%p190_p2) }
   0x7   : > { %193 = sbr.rel (%p190_p2) target bundleno = 397 (0x18d), region = 40  ;;  %v429_v2 = vpack.c.bf16 (!%p190_p2), %v232_v1, %v231_v0  ;;  %p218_p3 = scmp.lt.s32.totalorder (!%p190_p2), %s408_s25, 9  ;;  %v412_v5 = vld [vmem:[%s520_s2] ss:$0 sm:$0xff] (!%p190_p2)  ;;  %vm344_vm2 = vcmask (!%p190_p2), 7168  }
   0x8   : > { %v415_v10 = vld [vmem:[%s521_s3] ss:$0 sm:$0xff] (!%p190_p2) }
   0x9   : > { %430 = vmatprep.subr.bf16.mxu0 (!%p190_p2), %v429_v2 }
   0xa   : > { %432 = vmatpush3.bf16.msra.mxu0 (!%p190_p2), %v429_v2 }
   0xc   : > { %v341_v17 = vstv (!%p190_p2), %s340_s9 }
   0xe   : > { %s525_s25 = smov (!%p218_p3, %s408_s25), 9 }
   0xf   : > { %s409_s26 = sshll.u32 %s525_s25, 3 }
  0x10   : > { %s221_s29 = scalar_lea.vmem %s518_s0, %s409_s26  ;;  %s227_s12 = scalar_lea.vmem %s523_s5, %s409_s26 }
  0x11   : > { %v229_v3 = vld [vmem:[%s221_s29] sm:$0xff]  ;;  %v230_v4 = vld [vmem:[%s221_s29 + $0x8] sm:$0xff] }
  0x12   : > { %426 = vmatprep.mubr.msk.f32.mxu0 %vm240_vm0, %v229_v3 }
  0x13   : > { %427 = vmatmul.mubr.msk.f32.vlgmr.msra.gmra.mrb[0].mxu0 %vm240_vm0, %v230_v4 }
  0xe6   : > { %v428_v6 = vpop.f32.mrb[0].mxu0 }
  0xe7   : > { %v319_v7 = vadd.f32 %v428_v6, %v412_v5  ;;  %v313_v8 = vpop.f32.mrb[1].mxu0 }
  0xe8   : > { %v314_v9 = vadd.f32 %v412_v5, %v313_v8 }
  0xe9   : > { %441 = vtanh.f32 %v319_v7 }
  0xea   : > { %443 = vtanh.f32 %v314_v9 }
  0xf3   : > { %v442_v11 = vpop.eup %441 }
  0xf4   : > { %v444_v12 = vpop.eup %443  ;;  %v332_v15 = vmul.f32 %v442_v11, %v415_v10 }
  0xf5   : > { %v331_v13 = vmul.f32 %v444_v12, %v415_v10 }
  0xf6   : > { %v337_v16 = vsel %vm333_vm1, %v332_v15, 0.0 }
  0xf7   : > { %v334_v14 = vsel %vm333_vm1, %v331_v13, 0.0 }
  0xf8   : > { %335 = vadd.xlane.f32.xlu0 %v334_v14 }
  0xfc   : > { %338 = vadd.xlane.f32.xlu0 %v337_v16 }
 0x185   : > { %v336_v18 = vpop.xlane.xlu0 %335 }
 0x186   : > { %v342_v19 = vadd.f32 %v341_v17, %v336_v18 }
 0x188   : > { %345 = vst.msk [vmem:[%s227_s12] sm:$0xff] %vm344_vm2, %v342_v19 }
 0x189   : > { %v339_v20 = vpop.xlane.xlu0 %338 }
 0x18a   : > { %v343_v21 = vadd.f32 %v341_v17, %v339_v20 }
 0x18c   : > { %346 = vst.msk [vmem:[%s227_s12 + $0x8] sm:$0xff] %vm344_vm2, %v343_v21 }
 0x18d PF: > { %s16_s20 = sadd.s32 1, %s451_s20  }
 0x18e   : > { %p13_p4 = scmp.ge.s32.totalorder %s16_s20, 7  }
 0x190   :  { %15 = sbr.rel (!%p13_p4) target bundleno = 2 (0x2), region = 70 }

</bundles_post_ra>
